<compile_context>
chip_gen: v6e
topology: v6e:2x2x1
jax: 0.10.0
libtpu: 0.0.40
codegen_flags: <defaults>
</compile_context>

<pallas_src>
import math

import jax
import jax.numpy as jnp
from jax.experimental import pallas as pl
from jax.experimental.pallas import tpu as pltpu

_BN_EPS = 1e-5
_SQRT_2_OVER_PI = 0.7978845608028654


def _gelu_tanh(x):
    # tanh-approx GELU (EUP tanh). |err| vs exact erf-GELU is O(1e-3),
    # well inside the numerical test tolerance.
    return 0.5 * x * (1.0 + jnp.tanh(_SQRT_2_OVER_PI * (x + 0.044715 * x * x * x)))


# ---------------------------------------------------------------------------
# Fused COI kernel: NB images per grid step, everything in VMEM / vregs.
#   out[n, h, :] = GELU( x[n,h-1,:] @ A_up + x[n,h,:] @ A_mid
#                        + x[n,h+1,:] @ A_dn + bias )
# with zero rows outside [0, H).
# ---------------------------------------------------------------------------
def _make_coi_kernel(NB, H, WC):

    def kernel(x_ref, a_ref, b_ref, o_ref):
        x = x_ref[...]                                        # (NB, H, WC) f32
        xb = x.reshape(NB * H, WC).astype(jnp.bfloat16)       # tall MXU operand

        # Three banded matmuls (bf16 operands, f32 accumulation).
        y_up = jnp.dot(xb, a_ref[0], preferred_element_type=jnp.float32)
        y_md = jnp.dot(xb, a_ref[1], preferred_element_type=jnp.float32)
        y_dn = jnp.dot(xb, a_ref[2], preferred_element_type=jnp.float32)

        y_up = y_up.reshape(NB, H, WC)
        y_md = y_md.reshape(NB, H, WC)
        y_dn = y_dn.reshape(NB, H, WC)

        # Vertical +-1 taps: shift the per-row contributions by one row
        # (zero padding at the image top/bottom; batch boundaries are the
        # block boundaries so no cross-image leakage is possible).
        zrow = jnp.zeros((NB, 1, WC), jnp.float32)
        from_above = jnp.concatenate([zrow, y_up[:, : H - 1, :]], axis=1)
        from_below = jnp.concatenate([y_dn[:, 1:, :], zrow], axis=1)

        z = y_md + from_above + from_below + b_ref[...]       # single fused bias
        o_ref[...] = _gelu_tanh(z)

    return kernel


# ---------------------------------------------------------------------------
# Wrapper-side parameter folding:
#   BN -> scale/bias, depthwise taps + 1x1 conv + shortcut -> banded matrices.
# ---------------------------------------------------------------------------
def _fold_params(p, W):
    def bn_scale_bias(name):
        s = p[f"{name}_gamma"] / jnp.sqrt(p[f"{name}_var"] + _BN_EPS)
        b = p[f"{name}_beta"] - p[f"{name}_mean"] * s
        return s, b

    s1, b1 = bn_scale_bias("bn1")
    s2, b2 = bn_scale_bias("bn2")
    s3, b3 = bn_scale_bias("bn3")
    C = s1.shape[0]
    WC = W * C
    eye_w = jnp.eye(W, dtype=jnp.float32)

    def hband(di):
        # A_di[(w+dj-1)*C + c, w*C + c] = dw_w[c, di, dj] * s2[c]
        # (w-boundary zero padding encoded by the shifted identity).
        m = jnp.zeros((WC, WC), jnp.float32)
        for dj in range(3):
            off = dj - 1                                    # input col = w + off
            shift = jnp.eye(W, W, k=-off, dtype=jnp.float32)
            m = m + jnp.kron(shift, jnp.diag(p["dw_w"][:, di, dj] * s2))
        return m

    a_up = hband(0)                                          # from row h-1
    a_mid = (hband(1)                                        # from row h
             + jnp.kron(eye_w, p["pw_w"].T * s3[None, :])    # 1x1 conv (+BN3)
             + jnp.kron(eye_w, jnp.diag(s1)))                # BN1 shortcut
    a_dn = hband(2)                                          # from row h+1

    a_stack = jnp.stack([a_up, a_mid, a_dn], axis=0).astype(jnp.bfloat16)

    bias_c = (p["dw_b"] * s2 + b2) + (p["pw_b"] * s3 + b3) + b1          # (C,)
    bias = jnp.tile(bias_c, W).reshape(1, 1, WC).astype(jnp.float32)

    return a_stack, bias


# ---------------------------------------------------------------------------
# Forward (NCHW in / NCHW out, matching the PyTorch module interface).
# NOTE: in a full model the lane-dense (N, H, W*C) layout would be carried
#       across adjacent ops; the transposes here only exist to present the
#       PyTorch-compatible NCHW interface.
# ---------------------------------------------------------------------------
def coi_forward(x_nchw, params, *, rows_per_step=256):
    N, C, H, W = x_nchw.shape
    WC = W * C
    a_stack, bias = _fold_params(params, W)

    # NCHW -> lane-dense (N, H, W*C) slabs (NHWC flattened over (W, C)).
    x_flat = jnp.transpose(x_nchw, (0, 2, 3, 1)).reshape(N, H, WC)

    # Batch enough images per grid step to get a tall MXU operand
    # (NB*H ~ rows_per_step); for tiny N this collapses to a single step.
    nb = max(1, min(N, rows_per_step // max(H, 1)))
    while N % nb:                       # keep blocks exact (no partial blocks)
        nb -= 1
    grid = (N // nb,)

    out_flat = pl.pallas_call(
        _make_coi_kernel(nb, H, WC),
        out_shape=jax.ShapeDtypeStruct((N, H, WC), jnp.float32),
        grid=grid,
        in_specs=[
            pl.BlockSpec((nb, H, WC), lambda i: (i, 0, 0)),    # x slab
            pl.BlockSpec((3, WC, WC), lambda i: (0, 0, 0)),    # stacked A (bf16)
            pl.BlockSpec((1, 1, WC), lambda i: (0, 0, 0)),     # fused bias row
        ],
        out_specs=pl.BlockSpec((nb, H, WC), lambda i: (i, 0, 0)),
        compiler_params=pltpu.CompilerParams(
            dimension_semantics=("parallel",)),
    )(x_flat, a_stack, bias)

    return jnp.transpose(out_flat.reshape(N, H, W, C), (0, 3, 1, 2))


# ---------------------------------------------------------------------------
# Parameter init matching _init_weights (conv weight ~ N(0, sqrt(2/fan_out)),
# bias = 0; BN defaults gamma=1, beta=0, running_mean=0, running_var=1).
# ---------------------------------------------------------------------------
def init_params(key, C):
    k_dw, k_pw = jax.random.split(key)
    p = {
        # depthwise 3x3: fan_out = 3*3*C / groups(=C) = 9
        "dw_w": jax.random.normal(k_dw, (C, 3, 3), jnp.float32) * math.sqrt(2.0 / 9.0),
        "dw_b": jnp.zeros((C,), jnp.float32),
        # 1x1: fan_out = 1*1*C
        "pw_w": jax.random.normal(k_pw, (C, C), jnp.float32) * math.sqrt(2.0 / C),
        "pw_b": jnp.zeros((C,), jnp.float32),
    }
    for name in ("bn1", "bn2", "bn3"):
        p[f"{name}_gamma"] = jnp.ones((C,), jnp.float32)
        p[f"{name}_beta"] = jnp.zeros((C,), jnp.float32)
        p[f"{name}_mean"] = jnp.zeros((C,), jnp.float32)
        p[f"{name}_var"] = jnp.ones((C,), jnp.float32)
    return p


# ---------------------------------------------------------------------------
# Pure-JAX f32 reference (inference-mode BN, exact GELU) for a sanity check.
# ---------------------------------------------------------------------------
def coi_reference(x, p):
    def bn(y, name):
        s = p[f"{name}_gamma"] / jnp.sqrt(p[f"{name}_var"] + _BN_EPS)
        b = p[f"{name}_beta"] - p[f"{name}_mean"] * s
        return y * s[None, :, None, None] + b[None, :, None, None]

    C = x.shape[1]
    x_dw = jax.lax.conv_general_dilated(
        x, p["dw_w"][:, None, :, :], window_strides=(1, 1),
        padding=((1, 1), (1, 1)),
        dimension_numbers=("NCHW", "OIHW", "NCHW"),
        feature_group_count=C) + p["dw_b"][None, :, None, None]
    x_11 = jnp.einsum("nihw,oi->nohw", x, p["pw_w"]) + p["pw_b"][None, :, None, None]
    z = bn(x, "bn1") + bn(x_dw, "bn2") + bn(x_11, "bn3")
    return jax.nn.gelu(z, approximate=False)


if __name__ == "__main__":
    key = jax.random.PRNGKey(0)
    kp, kx = jax.random.split(key)

    N, C, H, W = 2, 8, 16, 16          # W*C = 128 -> fully lane-dense slabs
    params = init_params(kp, C)
    x = jax.random.normal(kx, (N, C, H, W), jnp.float32)

    out = jax.jit(coi_forward)(x, params)
    jax.block_until_ready(out)

    assert out.shape == (N, C, H, W), out.shape
    assert bool(jnp.all(jnp.isfinite(out)))

    ref = coi_reference(x, params)
    max_err = float(jnp.max(jnp.abs(out - ref)))
    mean_err = float(jnp.mean(jnp.abs(out - ref)))
    # bf16 MXU operands (f32 accumulation) + tanh-approx GELU: expect O(1e-2)
    # max error / O(1e-3) mean error; structural bugs would be O(1).
    assert max_err < 1e-1, f"mismatch vs reference: max_err={max_err}"
    assert mean_err < 1e-2, f"mismatch vs reference: mean_err={mean_err}"

    print("KERNEL_OK")
</pallas_src>

<mosaic_0001>
module attributes {stable_mosaic.version = 11 : i64} {
  func.func @kernel(%arg0: i32, %arg1: memref<2x16x128xf32, #tpu.memory_space<vmem>>, %arg2: memref<3x128x128xbf16, #tpu.memory_space<vmem>>, %arg3: memref<1x1x128xf32, #tpu.memory_space<vmem>>, %arg4: memref<2x16x128xf32, #tpu.memory_space<vmem>>) attributes {dimension_semantics = [#tpu.dimension_semantics<parallel>], iteration_bounds = array<i64: 1>, scalar_prefetch = 0 : i64, scratch_operands = 0 : i64, tpu.core_type = #tpu.core_type<tc>, window_params = [{transform_indices = @transform_0, window_bounds = array<i64: 2, 16, 128>}, {pipeline_mode = #tpu.pipeline_mode<synchronous>, transform_indices = @transform_1, window_bounds = array<i64: 3, 128, 128>}, {pipeline_mode = #tpu.pipeline_mode<synchronous>, transform_indices = @transform_2, window_bounds = array<i64: 1, 1, 128>}, {transform_indices = @transform_3, window_bounds = array<i64: 2, 16, 128>}]} {
    %c0 = arith.constant 0 : index
    %c0_0 = arith.constant 0 : index
    %c0_1 = arith.constant 0 : index
    %0 = vector.load %arg1[%c0, %c0_0, %c0_1] : memref<2x16x128xf32, #tpu.memory_space<vmem>>, vector<2x16x128xf32>
    %1 = vector.shape_cast %0 : vector<2x16x128xf32> to vector<32x128xf32>
    %2 = arith.truncf %1 : vector<32x128xf32> to vector<32x128xbf16>
    %c0_2 = arith.constant 0 : index
    %c0_3 = arith.constant 0 : index
    %c0_4 = arith.constant 0 : index
    %3 = vector.load %arg2[%c0_2, %c0_3, %c0_4] : memref<3x128x128xbf16, #tpu.memory_space<vmem>>, vector<1x128x128xbf16>
    %4 = vector.shape_cast %3 : vector<1x128x128xbf16> to vector<128x128xbf16>
    %cst = arith.constant dense<0.000000e+00> : vector<32x128xf32>
    %5 = tpu.matmul %2, %4, %cst {dimension_numbers = #tpu.dot_dimension_numbers<[1], [0], [0], [1], [0, 0, 1, 1], [], []>} : vector<32x128xbf16>, vector<128x128xbf16>, vector<32x128xf32> -> vector<32x128xf32>
    %c1 = arith.constant 1 : index
    %c0_5 = arith.constant 0 : index
    %c0_6 = arith.constant 0 : index
    %6 = vector.load %arg2[%c1, %c0_5, %c0_6] : memref<3x128x128xbf16, #tpu.memory_space<vmem>>, vector<1x128x128xbf16>
    %7 = vector.shape_cast %6 : vector<1x128x128xbf16> to vector<128x128xbf16>
    %cst_7 = arith.constant dense<0.000000e+00> : vector<32x128xf32>
    %8 = tpu.matmul %2, %7, %cst_7 {dimension_numbers = #tpu.dot_dimension_numbers<[1], [0], [0], [1], [0, 0, 1, 1], [], []>} : vector<32x128xbf16>, vector<128x128xbf16>, vector<32x128xf32> -> vector<32x128xf32>
    %c2 = arith.constant 2 : index
    %c0_8 = arith.constant 0 : index
    %c0_9 = arith.constant 0 : index
    %9 = vector.load %arg2[%c2, %c0_8, %c0_9] : memref<3x128x128xbf16, #tpu.memory_space<vmem>>, vector<1x128x128xbf16>
    %10 = vector.shape_cast %9 : vector<1x128x128xbf16> to vector<128x128xbf16>
    %cst_10 = arith.constant dense<0.000000e+00> : vector<32x128xf32>
    %11 = tpu.matmul %2, %10, %cst_10 {dimension_numbers = #tpu.dot_dimension_numbers<[1], [0], [0], [1], [0, 0, 1, 1], [], []>} : vector<32x128xbf16>, vector<128x128xbf16>, vector<32x128xf32> -> vector<32x128xf32>
    %12 = vector.shape_cast %5 : vector<32x128xf32> to vector<2x16x128xf32>
    %13 = vector.shape_cast %8 : vector<32x128xf32> to vector<2x16x128xf32>
    %14 = vector.shape_cast %11 : vector<32x128xf32> to vector<2x16x128xf32>
    %cst_11 = arith.constant 0.000000e+00 : f32
    %15 = vector.broadcast %cst_11 : f32 to vector<2x1x128xf32>
    %16 = vector.extract_strided_slice %12 {offsets = [0, 0, 0], sizes = [2, 15, 128], strides = [1, 1, 1]} : vector<2x16x128xf32> to vector<2x15x128xf32>
    %17 = tpu.concatenate %15, %16 in 1 : vector<2x1x128xf32>, vector<2x15x128xf32> -> vector<2x16x128xf32>
    %18 = vector.extract_strided_slice %14 {offsets = [0, 1, 0], sizes = [2, 15, 128], strides = [1, 1, 1]} : vector<2x16x128xf32> to vector<2x15x128xf32>
    %19 = tpu.concatenate %18, %15 in 1 : vector<2x15x128xf32>, vector<2x1x128xf32> -> vector<2x16x128xf32>
    %20 = arith.addf %13, %17 : vector<2x16x128xf32>
    %21 = arith.addf %20, %19 : vector<2x16x128xf32>
    %c0_12 = arith.constant 0 : index
    %c0_13 = arith.constant 0 : index
    %c0_14 = arith.constant 0 : index
    %22 = vector.load %arg3[%c0_12, %c0_13, %c0_14] : memref<1x1x128xf32, #tpu.memory_space<vmem>>, vector<1x1x128xf32>
    %23 = vector.broadcast %22 : vector<1x1x128xf32> to vector<2x16x128xf32>
    %24 = arith.addf %21, %23 : vector<2x16x128xf32>
    %cst_15 = arith.constant 5.000000e-01 : f32
    %25 = vector.broadcast %cst_15 : f32 to vector<2x16x128xf32>
    %26 = arith.mulf %25, %24 : vector<2x16x128xf32>
    %cst_16 = arith.constant 4.471500e-02 : f32
    %27 = vector.broadcast %cst_16 : f32 to vector<2x16x128xf32>
    %28 = arith.mulf %27, %24 : vector<2x16x128xf32>
    %29 = arith.mulf %28, %24 : vector<2x16x128xf32>
    %30 = arith.mulf %29, %24 : vector<2x16x128xf32>
    %31 = arith.addf %24, %30 : vector<2x16x128xf32>
    %cst_17 = arith.constant 0.797884583 : f32
    %32 = vector.broadcast %cst_17 : f32 to vector<2x16x128xf32>
    %33 = arith.mulf %32, %31 : vector<2x16x128xf32>
    %34 = math.tanh %33 : vector<2x16x128xf32>
    %cst_18 = arith.constant 1.000000e+00 : f32
    %35 = vector.broadcast %cst_18 : f32 to vector<2x16x128xf32>
    %36 = arith.addf %35, %34 : vector<2x16x128xf32>
    %37 = arith.mulf %26, %36 : vector<2x16x128xf32>
    %c0_19 = arith.constant 0 : index
    %c0_20 = arith.constant 0 : index
    %c0_21 = arith.constant 0 : index
    %38 = vector.load %arg4[%c0_19, %c0_20, %c0_21] : memref<2x16x128xf32, #tpu.memory_space<vmem>>, vector<2x16x128xf32>
    tpu.vector_store %arg4[%c0_19, %c0_20, %c0_21], %37 {strides = array<i32>} : memref<2x16x128xf32, #tpu.memory_space<vmem>>, vector<2x16x128xf32>,
    return
  }
  func.func @transform_0(%arg0: i32) -> (i32, i32, i32) {
    %c0_i32 = arith.constant 0 : i32
    %c0_i32_0 = arith.constant 0 : i32
    %c0_i32_1 = arith.constant 0 : i32
    return %arg0, %c0_i32, %c0_i32_0 : i32, i32, i32
  }
  func.func @transform_1(%arg0: i32) -> (i32, i32, i32) {
    %c0_i32 = arith.constant 0 : i32
    %c0_i32_0 = arith.constant 0 : i32
    %c0_i32_1 = arith.constant 0 : i32
    %c0_i32_2 = arith.constant 0 : i32
    return %c0_i32, %c0_i32_0, %c0_i32_1 : i32, i32, i32
  }
  func.func @transform_2(%arg0: i32) -> (i32, i32, i32) {
    %c0_i32 = arith.constant 0 : i32
    %c0_i32_0 = arith.constant 0 : i32
    %c0_i32_1 = arith.constant 0 : i32
    %c0_i32_2 = arith.constant 0 : i32
    return %c0_i32, %c0_i32_0, %c0_i32_1 : i32, i32, i32
  }
  func.func @transform_3(%arg0: i32) -> (i32, i32, i32) {
    %c0_i32 = arith.constant 0 : i32
    %c0_i32_0 = arith.constant 0 : i32
    %c0_i32_1 = arith.constant 0 : i32
    return %arg0, %c0_i32, %c0_i32_0 : i32, i32, i32
  }
}

</mosaic_0001>

<bundles_post_ra>
// kernel: tile.8
= control target key start
LH: loop header
LB: loop body
LE: loop exit
PB: predicated region body
PF: predicated region fallthrough
CT: control target
= control target key end

     0   :  { %s28_s0 = inlined_call_operand.vmem [shape: f32[8], index: 0, kind: input, shape index: {}]   ;;  %s29_s1 = inlined_call_operand.vmem [shape: f32[16,8], index: 1, kind: output, shape index: {}]  }
   0x1   :  { %v4_v0 = vld [vmem:[%s28_s0] ss:$0 sm:$0xff] }
   0x2   :  { %5 = vst [vmem:[%s29_s1] sm:$0xff] %v4_v0  ;;  %8 = vst [vmem:[%s29_s1 + $0x8] sm:$0xff] %v4_v0 }

// kernel: tile.9
= control target key start
LH: loop header
LB: loop body
LE: loop exit
PB: predicated region body
PF: predicated region fallthrough
CT: control target
= control target key end

     0   :  { %s133_s10 = smov 120   ;;  %s134_s11 = smov 104   ;;  %vm3_vm0 = vcmask 64512   ;;  %vm9_vm1 = vcmask 1048512   ;;  %vm15_vm2 = vcmask 982912   ;;  %vm21_vm3 = vcmask 917312   ;;  %s209_s0 = inlined_call_operand.vmem [shape: f32[16,8], index: 0, kind: input, shape index: {}]   ;;  %s210_s1 = inlined_call_operand.vmem [shape: f32[1,1,128], index: 1, kind: output, shape index: {}]  }
   0x1   :  { %v103_v0 = vld [vmem:[%s209_s0 + $0xf] sm:$0x1]   ;;  %v105_v1 = vld [vmem:[%s209_s0 + $0xd] sm:$0x1]   ;;  %v104_v2 = vld [vmem:[%s209_s0 + $0xe] sm:$0x1]  }
   0x2   :  { %7 = vrot.lane.b32.xlu0 %v103_v0, %s133_s10  ;;  %19 = vrot.lane.b32.xlu1 %v105_v1, %s134_s11  ;;  %v106_v3 = vld [vmem:[%s209_s0 + $0xc] sm:$0x1]   ;;  %s135_s16 = smov 112   ;;  %s136_s17 = smov 96   ;;  %v107_v4 = vld [vmem:[%s209_s0 + $0xb] sm:$0x1]  }
   0x3   :  { %v108_v5 = vld [vmem:[%s209_s0 + $0xa] sm:$0x1]   ;;  %v2_v6 = vld [vmem:[%s209_s0] sm:$0x1]   ;;  %s137_s24 = smov 88   ;;  %s138_s25 = smov 80  }
   0x4   :  { %4 = vst.msk [vmem:[#allocation0] sm:$0x1] %vm3_vm0, %v2_v6   ;;  %v109_v7 = vld [vmem:[%s209_s0 + $0x9] sm:$0x1]   ;;  %v110_v8 = vld [vmem:[%s209_s0 + $0x8] sm:$0x1]  }
   0x5   :  { %s139_s30 = smov 72   ;;  %s140_s2 = smov 64   ;;  %v111_v9 = vld [vmem:[%s209_s0 + $0x7] sm:$0x1]   ;;  %v112_v10 = vld [vmem:[%s209_s0 + $0x6] sm:$0x1]  }
   0x6   :  { %13 = vrot.lane.b32.xlu0 %v104_v2, %s135_s16  ;;  %25 = vrot.lane.b32.xlu1 %v106_v3, %s136_s17  ;;  %s141_s7 = smov 56   ;;  %s142_s8 = smov 48   ;;  %v113_v11 = vld [vmem:[%s209_s0 + $0x5] sm:$0x1]   ;;  %v114_v12 = vld [vmem:[%s209_s0 + $0x4] sm:$0x1]  }
   0x7   :  { %s143_s13 = smov 40   ;;  %s144_s14 = smov 32   ;;  %v115_v13 = vld [vmem:[%s209_s0 + $0x3] sm:$0x1]   ;;  %v116_v14 = vld [vmem:[%s209_s0 + $0x2] sm:$0x1]  }
   0x8   :  { %s145_s19 = smov 24   ;;  %s146_s20 = smov 16   ;;  %v117_v15 = vld [vmem:[%s209_s0 + $0x1] sm:$0x1]   ;;  %vm27_vm4 = vcmask 851712   ;;  %vm33_vm5 = vcmask 786112  }
   0x9   :  { %s147_s0 = smov 8   ;;  %vm39_vm6 = vcmask 720512   ;;  %vm45_vm7 = vcmask 654912   ;;  %vm51_vm8 = vcmask 589312   ;;  %vm57_vm9 = vcmask 523712  }
   0xa   :  { %31 = vrot.lane.b32.xlu0 %v107_v4, %s137_s24  ;;  %37 = vrot.lane.b32.xlu1 %v108_v5, %s138_s25  ;;  %vm63_vm10 = vcmask 458112   ;;  %vm69_vm11 = vcmask 392512   ;;  %vm75_vm12 = vcmask 326912   ;;  %vm81_vm13 = vcmask 261312  }
   0xb   :  { %vm87_vm14 = vcmask 195712   ;;  %vm93_vm15 = vcmask 130112  }
   0xe   :  { %43 = vrot.lane.b32.xlu0 %v109_v7, %s139_s30  ;;  %49 = vrot.lane.b32.xlu1 %v110_v8, %s140_s2 }
  0x12   :  { %55 = vrot.lane.b32.xlu0 %v111_v9, %s141_s7  ;;  %61 = vrot.lane.b32.xlu1 %v112_v10, %s142_s8 }
  0x16   :  { %67 = vrot.lane.b32.xlu0 %v113_v11, %s143_s13  ;;  %73 = vrot.lane.b32.xlu1 %v114_v12, %s144_s14 }
  0x1a   :  { %79 = vrot.lane.b32.xlu0 %v115_v13, %s145_s19  ;;  %85 = vrot.lane.b32.xlu1 %v116_v14, %s146_s20 }
  0x1e   :  { %91 = vrot.lane.b32.xlu0 %v117_v15, %s147_s0 }
  0x74   :  { %v8_v16 = vpop.permute.xlu0 %7   ;;  %v20_v17 = vpop.permute.xlu1 %19  }
  0x75   :  { %10 = vst.msk [vmem:[#allocation0] sm:$0x1] %vm9_vm1, %v8_v16  }
  0x78   :  { %v14_v18 = vpop.permute.xlu0 %13   ;;  %v26_v19 = vpop.permute.xlu1 %25  }
  0x79   :  { %16 = vst.msk [vmem:[#allocation0] sm:$0x1] %vm15_vm2, %v14_v18  }
  0x7a   :  { %22 = vst.msk [vmem:[#allocation0] sm:$0x1] %vm21_vm3, %v20_v17  }
  0x7b   :  { %28 = vst.msk [vmem:[#allocation0] sm:$0x1] %vm27_vm4, %v26_v19  }
  0x7c   :  { %v32_v20 = vpop.permute.xlu0 %31   ;;  %v38_v21 = vpop.permute.xlu1 %37  }
  0x7d   :  { %34 = vst.msk [vmem:[#allocation0] sm:$0x1] %vm33_vm5, %v32_v20  }
  0x7e   :  { %40 = vst.msk [vmem:[#allocation0] sm:$0x1] %vm39_vm6, %v38_v21  }
  0x80   :  { %v44_v22 = vpop.permute.xlu0 %43   ;;  %v50_v23 = vpop.permute.xlu1 %49  }
  0x81   :  { %46 = vst.msk [vmem:[#allocation0] sm:$0x1] %vm45_vm7, %v44_v22  }
  0x82   :  { %52 = vst.msk [vmem:[#allocation0] sm:$0x1] %vm51_vm8, %v50_v23  }
  0x84   :  { %v56_v24 = vpop.permute.xlu0 %55   ;;  %v62_v25 = vpop.permute.xlu1 %61  }
  0x85   :  { %58 = vst.msk [vmem:[#allocation0] sm:$0x1] %vm57_vm9, %v56_v24  }
  0x86   :  { %64 = vst.msk [vmem:[#allocation0] sm:$0x1] %vm63_vm10, %v62_v25  }
  0x88   :  { %v68_v26 = vpop.permute.xlu0 %67   ;;  %v74_v27 = vpop.permute.xlu1 %73  }
  0x89   :  { %70 = vst.msk [vmem:[#allocation0] sm:$0x1] %vm69_vm11, %v68_v26  }
  0x8a   :  { %76 = vst.msk [vmem:[#allocation0] sm:$0x1] %vm75_vm12, %v74_v27  }
  0x8c   :  { %v80_v28 = vpop.permute.xlu0 %79   ;;  %v86_v29 = vpop.permute.xlu1 %85  }
  0x8d   :  { %82 = vst.msk [vmem:[#allocation0] sm:$0x1] %vm81_vm13, %v80_v28  }
  0x8e   :  { %88 = vst.msk [vmem:[#allocation0] sm:$0x1] %vm87_vm14, %v86_v29  }
  0x90   :  { %v92_v30 = vpop.permute.xlu0 %91  }
  0x91   :  { %94 = vst.msk [vmem:[#allocation0] sm:$0x1] %vm93_vm15, %v92_v30  }
  0x98   :  { %v99_v31 = vld [vmem:[#allocation0] sm:$0x1] }
  0x99   :  { %102 = vst [vmem:[%s210_s1] sm:$0x1] %v99_v31 }

// kernel: coi_forward.1
= control target key start
LH: loop header
LB: loop body
LE: loop exit
PB: predicated region body
PF: predicated region fallthrough
CT: control target
= control target key end

     0   :  { %vm366_vm0 = vcmask 1040384   ;;  %vm383_vm1 = vcmask 1046528   ;;  %s761_s1 = inlined_call_operand.vmem [shape: bf16[3,128,128], index: 1, kind: input, shape index: {}]   ;;  %s762_s0 = inlined_call_operand.vmem [shape: f32[2,16,128], index: 0, kind: input, shape index: {}]   ;;  %s763_s2 = inlined_call_operand.vmem [shape: f32[1,1,128], index: 2, kind: input, shape index: {}]   ;;  %s764_s3 = inlined_call_operand.vmem [shape: f32[2,16,128], index: 3, kind: output, shape index: {}]  }
   0x1   :  { %v606_v0 = vld [vmem:[%s761_s1 + $0x38] sm:$0xff]   ;;  %v608_v2 = vld [vmem:[%s761_s1 + $0x30] sm:$0xff]   ;;  %v610_v4 = vld [vmem:[%s761_s1 + $0x28] sm:$0xff]  }
   0x2   :  { %v607_v1 = vld [vmem:[%s761_s1 + $0x78] sm:$0xff]   ;;  %546 = vmatprep.subr.bf16.mxu0 %v606_v0  ;;  %v609_v3 = vld [vmem:[%s761_s1 + $0x70] sm:$0xff]   ;;  %v611_v5 = vld [vmem:[%s761_s1 + $0x68] sm:$0xff]  }
   0x3   :  { %547 = vmatpush3.bf16.msra.mxu0 %v606_v0  ;;  %566 = vmatprep.subr.bf16.mxu1 %v607_v1  ;;  %v612_v6 = vld [vmem:[%s761_s1 + $0x20] sm:$0xff]   ;;  %v614_v8 = vld [vmem:[%s761_s1 + $0x18] sm:$0xff]   ;;  %v16_v11 = vld [vmem:[%s762_s0 + $0x8] sm:$0xff] }
   0x4   :  { %548 = vmatprep.subr.bf16.mxu0 %v608_v2  ;;  %567 = vmatpush3.bf16.msra.mxu1 %v607_v1  ;;  %v613_v7 = vld [vmem:[%s761_s1 + $0x60] sm:$0xff]   ;;  %v615_v9 = vld [vmem:[%s761_s1 + $0x58] sm:$0xff]   ;;  %v616_v12 = vld [vmem:[%s761_s1 + $0x10] sm:$0xff]  }
   0x5   :  { %568 = vmatprep.subr.bf16.mxu1 %v609_v3  ;;  %v15_v10 = vld [vmem:[%s762_s0] sm:$0xff]  ;;  %v617_v14 = vld [vmem:[%s761_s1 + $0x50] sm:$0xff]   ;;  %v618_v15 = vld [vmem:[%s761_s1 + $0x8] sm:$0xff]  }
   0x6   :  { %v19_v13 = vpack.c.bf16 %v16_v11, %v15_v10  ;;  %v619_v16 = vld [vmem:[%s761_s1 + $0x48] sm:$0xff]   ;;  %v620_v17 = vld [vmem:[%s761_s1] sm:$0xff]   ;;  %v17_v19 = vld [vmem:[%s762_s0 + $0x10] sm:$0xff] }
   0x7   :  { %549 = vmatpush3.bf16.msra.mxu0 %v608_v2  ;;  %v621_v18 = vld [vmem:[%s761_s1 + $0x40] sm:$0xff]   ;;  %v18_v20 = vld [vmem:[%s762_s0 + $0x18] sm:$0xff]  ;;  %v623_v23 = vld [vmem:[%s761_s1 + $0xb0] sm:$0xff]  }
   0x8   :  { %550 = vmatprep.subr.bf16.mxu0 %v610_v4  ;;  %569 = vmatpush3.bf16.msra.mxu1 %v609_v3  ;;  %v622_v21 = vld [vmem:[%s761_s1 + $0xb8] sm:$0xff]   ;;  %v20_v22 = vpack.c.bf16 %v18_v20, %v17_v19  ;;  %v624_v24 = vld [vmem:[%s761_s1 + $0xa8] sm:$0xff]   ;;  %v625_v25 = vld [vmem:[%s761_s1 + $0xa0] sm:$0xff]  }
   0x9   :  { %570 = vmatprep.subr.bf16.mxu1 %v611_v5  ;;  %562 = vmatprep.mubr.bf16.mxu0 %v19_v13  ;;  %v626_v26 = vld [vmem:[%s761_s1 + $0x98] sm:$0xff]   ;;  %v627_v27 = vld [vmem:[%s761_s1 + $0x90] sm:$0xff]   ;;  %v628_v28 = vld [vmem:[%s761_s1 + $0x88] sm:$0xff]  }
   0xa   :  { %582 = vmatprep.mubr.bf16.mxu1 %v19_v13  ;;  %v629_v29 = vld [vmem:[%s761_s1 + $0x80] sm:$0xff]  }
   0xb   :  { %551 = vmatpush3.bf16.msra.mxu0 %v610_v4  ;;  %v515_v57 = vld [vmem:[%s763_s2] ss:$0 sm:$0xff] }
   0xc   :  { %552 = vmatprep.subr.bf16.mxu0 %v612_v6  ;;  %571 = vmatpush3.bf16.msra.mxu1 %v611_v5 }
   0xd   :  { %572 = vmatprep.subr.bf16.mxu1 %v613_v7 }
   0xf   :  { %553 = vmatpush3.bf16.msra.mxu0 %v612_v6 }
  0x10   :  { %554 = vmatprep.subr.bf16.mxu0 %v614_v8  ;;  %573 = vmatpush3.bf16.msra.mxu1 %v613_v7 }
  0x11   :  { %574 = vmatprep.subr.bf16.mxu1 %v615_v9 }
  0x13   :  { %555 = vmatpush3.bf16.msra.mxu0 %v614_v8 }
  0x14   :  { %556 = vmatprep.subr.bf16.mxu0 %v616_v12  ;;  %575 = vmatpush3.bf16.msra.mxu1 %v615_v9 }
  0x15   :  { %576 = vmatprep.subr.bf16.mxu1 %v617_v14 }
  0x17   :  { %557 = vmatpush3.bf16.msra.mxu0 %v616_v12 }
  0x18   :  { %558 = vmatprep.subr.bf16.mxu0 %v618_v15  ;;  %577 = vmatpush3.bf16.msra.mxu1 %v617_v14 }
  0x19   :  { %578 = vmatprep.subr.bf16.mxu1 %v619_v16 }
  0x1b   :  { %559 = vmatpush3.bf16.msra.mxu0 %v618_v15 }
  0x1c   :  { %560 = vmatprep.subr.bf16.mxu0 %v620_v17  ;;  %579 = vmatpush3.bf16.msra.mxu1 %v619_v16 }
  0x1d   :  { %580 = vmatprep.subr.bf16.mxu1 %v621_v18 }
  0x1f   :  { %561 = vmatpush3.bf16.msra.mxu0 %v620_v17 }
  0x20   :  { %581 = vmatpush3.bf16.msra.mxu1 %v621_v18  ;;  %586 = vmatprep.subr.bf16.mxu0 %v622_v21 }
  0x22   :  { %563 = vmatmul.mubr.bf16.vlgmr.msra.gmra.mxu0 %v20_v22 }
  0x23   :  { %587 = vmatpush3.bf16.msra.mxu0 %v622_v21  ;;  %583 = vmatmul.mubr.bf16.vlgmr.msra.gmra.mxu1 %v20_v22 }
  0x24   :  { %588 = vmatprep.subr.bf16.mxu0 %v623_v23  ;;  %602 = vmatprep.mubr.bf16.mxu0 %v19_v13 }
  0x27   :  { %589 = vmatpush3.bf16.msra.mxu0 %v623_v23 }
  0x28   :  { %590 = vmatprep.subr.bf16.mxu0 %v624_v24 }
  0x2b   :  { %591 = vmatpush3.bf16.msra.mxu0 %v624_v24 }
  0x2c   :  { %592 = vmatprep.subr.bf16.mxu0 %v625_v25 }
  0x2f   :  { %593 = vmatpush3.bf16.msra.mxu0 %v625_v25 }
  0x30   :  { %594 = vmatprep.subr.bf16.mxu0 %v626_v26 }
  0x33   :  { %595 = vmatpush3.bf16.msra.mxu0 %v626_v26 }
  0x34   :  { %596 = vmatprep.subr.bf16.mxu0 %v627_v27 }
  0x37   :  { %597 = vmatpush3.bf16.msra.mxu0 %v627_v27 }
  0x38   :  { %598 = vmatprep.subr.bf16.mxu0 %v628_v28 }
  0x3b   :  { %599 = vmatpush3.bf16.msra.mxu0 %v628_v28 }
  0x3c   :  { %600 = vmatprep.subr.bf16.mxu0 %v629_v29 }
  0x3f   :  { %601 = vmatpush3.bf16.msra.mxu0 %v629_v29 }
  0x42   :  { %603 = vmatmul.mubr.bf16.vlgmr.msra.gmra.mxu0 %v20_v22 }
  0xe2   :  { %v564_v30 = vpop.f32.mrf.mxu0 }
  0xe3   :  { %v584_v32 = vpop.f32.mrf.mxu1  ;;  %v370_v36 = vrot.slane %v564_v30, 7 }
  0xe4   :  { %v119_v31 = vpop.f32.mrf.mxu0 }
  0xe5   :  { %v233_v34 = vpop.f32.mrf.mxu1  ;;  %v367_v39 = vrot.slane %v119_v31, 7  ;;  %v378_v43 = vsel %vm366_vm0, 0.0, %v370_v36 }
  0xe6   :  { %v565_v33 = vpop.f32.mrf.mxu0  ;;  %v398_v51 = vadd.f32 %v584_v32, %v378_v43 }
  0xe7   :  { %v371_v37 = vrot.slane %v565_v33, 7  ;;  %v585_v41 = vpop.f32.mrf.mxu1  ;;  %v377_v46 = vsel %vm366_vm0, 0.0, %v367_v39 }
  0xe8   :  { %v122_v35 = vpop.f32.mrf.mxu0  ;;  %v396_v59 = vadd.f32 %v377_v46, %v233_v34 }
  0xe9   :  { %v368_v40 = vrot.slane %v122_v35, 7  ;;  %v372_v44 = vsel %vm366_vm0, %v370_v36, %v371_v37  ;;  %v236_v47 = vpop.f32.mrf.mxu1 }
  0xea   :  { %v399_v52 = vadd.f32 %v585_v41, %v372_v44 }
  0xeb   :  { %v369_v48 = vsel %vm366_vm0, %v367_v39, %v368_v40 }
  0xec   :  { %v397_v60 = vadd.f32 %v369_v48, %v236_v47 }
 0x102   :  { %v604_v38 = vpop.f32.mrf.mxu0 }
 0x103   :  { %v387_v49 = vrot.slane %v604_v38, 1 }
 0x104   :  { %v347_v42 = vpop.f32.mrf.mxu0 }
 0x105   :  { %v384_v54 = vrot.slane %v347_v42, 1 }
 0x106   :  { %v605_v45 = vpop.f32.mrf.mxu0 }
 0x107   :  { %v388_v50 = vrot.slane %v605_v45, 1 }
 0x108   :  { %v350_v53 = vpop.f32.mrf.mxu0 }
 0x109   :  { %v389_v55 = vsel %vm383_vm1, %v387_v49, %v388_v50  ;;  %v395_v56 = vsel %vm383_vm1, %v388_v50, 0.0  ;;  %v385_v58 = vrot.slane %v350_v53, 1 }
 0x10a   :  { %v402_v61 = vadd.f32 %v398_v51, %v389_v55  ;;  %v403_v62 = vadd.f32 %v399_v52, %v395_v56 }
 0x10b   :  { %v386_v63 = vsel %vm383_vm1, %v384_v54, %v385_v58  ;;  %v394_v0 = vsel %vm383_vm1, %v385_v58, 0.0 }
 0x10c   :  { %v413_v1 = vadd.f32 %v515_v57, %v402_v61  ;;  %v414_v2 = vadd.f32 %v515_v57, %v403_v62  ;;  %v400_v3 = vadd.f32 %v396_v59, %v386_v63  ;;  %v401_v4 = vadd.f32 %v397_v60, %v394_v0 }
 0x10e   :  { %v421_v5 = vmul.f32 0.044715, %v413_v1  ;;  %v422_v6 = vmul.f32 0.044715, %v414_v2  ;;  %v411_v7 = vadd.f32 %v515_v57, %v400_v3  ;;  %v412_v8 = vadd.f32 %v515_v57, %v401_v4 }
 0x10f   :  { %v417_v29 = vmul.f32 0.5, %v413_v1  ;;  %v418_v31 = vmul.f32 0.5, %v414_v2 }
 0x110   :  { %v425_v9 = vmul.f32 %v421_v5, %v413_v1  ;;  %v426_v10 = vmul.f32 %v422_v6, %v414_v2  ;;  %v419_v11 = vmul.f32 0.044715, %v411_v7  ;;  %v420_v12 = vmul.f32 0.044715, %v412_v8 }
 0x111   :  { %v415_v37 = vmul.f32 0.5, %v411_v7  ;;  %v416_v39 = vmul.f32 0.5, %v412_v8 }
 0x112   :  { %v429_v13 = vmul.f32 %v425_v9, %v413_v1  ;;  %v430_v14 = vmul.f32 %v426_v10, %v414_v2  ;;  %v423_v15 = vmul.f32 %v419_v11, %v411_v7  ;;  %v424_v16 = vmul.f32 %v420_v12, %v412_v8 }
 0x114   :  { %v433_v17 = vadd.f32 %v429_v13, %v413_v1  ;;  %v434_v18 = vadd.f32 %v430_v14, %v414_v2  ;;  %v427_v19 = vmul.f32 %v423_v15, %v411_v7  ;;  %v428_v20 = vmul.f32 %v424_v16, %v412_v8 }
 0x116   :  { %v437_v21 = vmul.f32 0.7978846, %v433_v17  ;;  %v438_v22 = vmul.f32 0.7978846, %v434_v18  ;;  %v431_v23 = vadd.f32 %v427_v19, %v411_v7  ;;  %v432_v24 = vadd.f32 %v428_v20, %v412_v8 }
 0x118   :  { %630 = vtanh.f32 %v437_v21  ;;  %v435_v25 = vmul.f32 0.7978846, %v431_v23  ;;  %v436_v26 = vmul.f32 0.7978846, %v432_v24 }
 0x119   :  { %632 = vtanh.f32 %v438_v22 }
 0x11a   :  { %634 = vtanh.f32 %v435_v25 }
 0x11b   :  { %636 = vtanh.f32 %v436_v26 }
 0x125   :  { %v631_v27 = vpop.eup %630 }
 0x126   :  { %v633_v28 = vpop.eup %632  ;;  %v445_v30 = vadd.f32 1.0, %v631_v27 }
 0x127   :  { %v446_v32 = vadd.f32 1.0, %v633_v28  ;;  %v635_v33 = vpop.eup %634 }
 0x128   :  { %v449_v34 = vmul.f32 %v445_v30, %v417_v29  ;;  %v637_v35 = vpop.eup %636  ;;  %v443_v38 = vadd.f32 1.0, %v635_v33 }
 0x129   :  { %v450_v36 = vmul.f32 %v446_v32, %v418_v31  ;;  %v444_v40 = vadd.f32 1.0, %v637_v35 }
 0x12a   :  { %453 = vst [vmem:[%s764_s3 + $0x10] sm:$0xff] %v449_v34  ;;  %v447_v41 = vmul.f32 %v443_v38, %v415_v37 }
 0x12b   :  { %454 = vst [vmem:[%s764_s3 + $0x18] sm:$0xff] %v450_v36  ;;  %v448_v42 = vmul.f32 %v444_v40, %v416_v39 }
 0x12c   :  { %451 = vst [vmem:[%s764_s3] sm:$0xff] %v447_v41 }
 0x12d   :  { %452 = vst [vmem:[%s764_s3 + $0x8] sm:$0xff] %v448_v42 }

</bundles_post_ra>
